<compile_context>
chip_gen: v6e
topology: v6e:2x2x1
jax: 0.10.0
libtpu: 0.0.40
codegen_flags: <defaults>
</compile_context>

<pallas_src>
import functools

import jax
import jax.numpy as jnp
from jax.experimental import pallas as pl
from jax.experimental.pallas import tpu as pltpu


def _round_up(x: int, m: int) -> int:
    return (x + m - 1) // m * m


def _batch_tiling(batch: int, max_tile: int = 1024):
    """Pick (TILE_B, n_steps): multiple-of-8 tile, <= max_tile rows, >= 2 grid
    steps when the batch allows it (keeps v7x's 2nd TensorCore busy), and at
    most 8*n_steps wasted (padded) rows."""
    b8 = _round_up(batch, 8)
    if b8 <= 8:
        return b8, 1
    n_steps = max(2, pl.cdiv(b8, max_tile))
    tile = _round_up(pl.cdiv(b8, n_steps), 8)
    n_steps = pl.cdiv(b8, tile)
    return tile, n_steps


# ----------------------------------------------------------------------------
# Fused MLP kernel: (optional circle lift) -> [linear + leaky_relu]*(L-1) -> linear
# refs = (x_ref, w0, b0, w1, b1, ..., w_{L-1}, b_{L-1}, o_ref)
# ----------------------------------------------------------------------------
def _fused_mlp_kernel(*refs, n_layers: int, negative_slope: float, z1: bool):
    x_ref = refs[0]
    o_ref = refs[-1]

    x = x_ref[...].astype(jnp.float32)                    # (TILE_B, D_in)

    # z1 circle topology: [cos(x0), sin(x0), x1, ...]  (cos/sin -> EUP slot)
    if z1:
        x0 = x[:, 0:1]
        parts = [jnp.cos(x0), jnp.sin(x0)]
        if x.shape[1] > 1:
            parts.append(x[:, 1:])
        h = jnp.concatenate(parts, axis=-1)               # (TILE_B, D_in + 1)
    else:
        h = x

    # Zero-pad (VMEM only) up to the first layer's padded fan_in.  Exact
    # because the padded weight rows are zero.
    k_pad = refs[1].shape[0]
    if h.shape[1] < k_pad:
        zeros = jnp.zeros((h.shape[0], k_pad - h.shape[1]), jnp.float32)
        h = jnp.concatenate([h, zeros], axis=-1)

    for i in range(n_layers):
        w = refs[1 + 2 * i][...]                          # (Din_pad, Dout_pad), bf16/f32
        b = refs[2 + 2 * i][...]                          # (1, Dout_pad), f32
        lhs = h.astype(w.dtype) if w.dtype != h.dtype else h
        # MXU matmul with f32 accumulation; bias + activation stay in f32.
        y = jnp.dot(lhs, w, preferred_element_type=jnp.float32) + b
        if i != n_layers - 1:
            # leaky_relu(y, s) with s in (0, 1) == max(y, s*y)  (mul + max).
            # NOTE: padded lanes stay exactly 0 only because f(0) == 0 here;
            # keep that invariant if the activation ever changes.
            y = jnp.maximum(y, negative_slope * y)
        h = y
    o_ref[...] = h.astype(o_ref.dtype)


# ----------------------------------------------------------------------------
# One-time parameter preparation: transpose to (in, out), pad to 128 lanes.
# ----------------------------------------------------------------------------
def prepare_fcnet_params(params, matmul_dtype=jnp.bfloat16):
    """params: list of (w (out,in), b (out,)) as in nn.Linear.

    Weights are transposed/padded once to (Din_pad, Dout_pad) in `matmul_dtype`
    (bf16 by default: MXU-native, half the HBM/VMEM footprint); biases are
    padded f32 (1, Dout_pad).  Zero padding is exact: padded input columns hit
    zero weight rows, padded output lanes get zero weight-cols + zero bias and
    stay zero through leaky_relu.
    """
    weights, biases = [], []
    for w, b in params:
        fan_out, fan_in = w.shape
        di = _round_up(fan_in, 128)
        do = _round_up(fan_out, 128)
        w_t = (jnp.zeros((di, do), matmul_dtype)
               .at[:fan_in, :fan_out].set(w.T.astype(matmul_dtype)))
        b_p = jnp.zeros((1, do), jnp.float32).at[0, :fan_out].set(
            b.astype(jnp.float32))
        weights.append(w_t)
        biases.append(b_p)
    return {"weights": weights, "biases": biases}


# ----------------------------------------------------------------------------
# Forward pass (matches FullyConnectedNet.forward).  `out_dim`, `z1`, slope are
# STATIC kwargs (bind them with functools.partial before jax.jit).
# ----------------------------------------------------------------------------
def fcnet_forward(prepared, x, *, out_dim, z1_circle_topology=False,
                  negative_slope=0.2, out_dtype=jnp.float32):
    weights = prepared["weights"]
    biases = prepared["biases"]
    n_layers = len(weights)

    B, D_in = x.shape
    D_out_pad = weights[-1].shape[1]

    TILE_B, n_steps = _batch_tiling(B)
    B_pad = TILE_B * n_steps
    if B_pad != B:
        # Row padding only (D_in stays at its true, small width).
        x = jnp.pad(x, ((0, B_pad - B), (0, 0)))

    in_specs = [pl.BlockSpec((TILE_B, D_in), lambda i: (i, 0))]
    operands = [x]
    for w, b in zip(weights, biases):
        # Constant index_map -> weights/biases resident across batch tiles.
        in_specs.append(pl.BlockSpec(w.shape, lambda i: (0, 0)))
        in_specs.append(pl.BlockSpec(b.shape, lambda i: (0, 0)))
        operands.append(w)
        operands.append(b)

    # VMEM budget: double-buffered x/out tiles + (double-buffered) resident
    # weights/biases + a few live activation tiles.
    out_itemsize = jnp.dtype(out_dtype).itemsize
    weight_bytes = sum(int(w.size) * w.dtype.itemsize +
                       int(b.size) * b.dtype.itemsize
                       for w, b in zip(weights, biases))
    max_feat = max(w.shape[1] for w in weights)
    est = (2 * TILE_B * D_in * 4
           + 2 * TILE_B * D_out_pad * out_itemsize
           + 2 * weight_bytes
           + 4 * TILE_B * max_feat * 4)
    vmem_limit = int(min(max(2 * est, 32 * 2 ** 20), 64 * 2 ** 20))

    kernel = functools.partial(_fused_mlp_kernel, n_layers=n_layers,
                               negative_slope=negative_slope,
                               z1=z1_circle_topology)

    out_pad = pl.pallas_call(
        kernel,
        out_shape=jax.ShapeDtypeStruct((B_pad, D_out_pad), out_dtype),
        grid=(n_steps,),
        in_specs=in_specs,
        out_specs=pl.BlockSpec((TILE_B, D_out_pad), lambda i: (i, 0)),
        compiler_params=pltpu.CompilerParams(
            dimension_semantics=("parallel",),
            vmem_limit_bytes=vmem_limit),
    )(*operands)

    return out_pad[:B, :out_dim]


# ----------------------------------------------------------------------------
# Deterministic parameter construction (mimics nn.Linear default init)
# ----------------------------------------------------------------------------
def init_fcnet_params(key, inp_dim, out_dim, hidden_dim=100, num_hidden=1,
                      z1_circle_topology=False):
    if z1_circle_topology:
        inp_dim += 1
    dims = [inp_dim] + [hidden_dim] * num_hidden + [out_dim]
    params = []
    for i in range(len(dims) - 1):
        fan_in, fan_out = dims[i], dims[i + 1]
        key, kw, kb = jax.random.split(key, 3)
        bound = 1.0 / (fan_in ** 0.5)
        w = jax.random.uniform(kw, (fan_out, fan_in), jnp.float32, -bound, bound)
        b = jax.random.uniform(kb, (fan_out,), jnp.float32, -bound, bound)
        params.append((w, b))
    return params


# Pure-JAX reference for correctness checking.
def fcnet_forward_ref(params, x, z1_circle_topology=False):
    if z1_circle_topology:
        x = jnp.concatenate(
            [jnp.cos(x[:, 0:1]), jnp.sin(x[:, 0:1]), x[:, 1:]], axis=1)
    n_layers = len(params)
    for i, (w, b) in enumerate(params):
        y = x @ w.T + b
        if i != n_layers - 1:
            y = jnp.where(y > 0, y, 0.2 * y)
        x = y
    return x


if __name__ == "__main__":
    key = jax.random.PRNGKey(0)
    kx, kx2, kp = jax.random.split(key, 3)

    inp_dim = 4
    out_dim = 2
    hidden_dim = 100   # module default; exercises 100 -> 128 lane padding
    num_hidden = 2
    z1 = True

    params = init_fcnet_params(kp, inp_dim, out_dim, hidden_dim=hidden_dim,
                               num_hidden=num_hidden, z1_circle_topology=z1)

    # out_dim / z1 are STATIC (bound before jit) -> no traced slice bounds.
    fwd = jax.jit(functools.partial(
        fcnet_forward, out_dim=out_dim, z1_circle_topology=z1))

    # --- small batch, exact f32 matmul path ---
    x = jax.random.normal(kx, (8, inp_dim), jnp.float32)
    ref = fcnet_forward_ref(params, x, z1_circle_topology=z1)
    prep_f32 = prepare_fcnet_params(params, matmul_dtype=jnp.float32)
    out_f32 = jax.block_until_ready(fwd(prep_f32, x))
    assert out_f32.shape == (8, out_dim)
    assert jnp.allclose(out_f32, ref, atol=1e-5, rtol=1e-5)

    # --- default bf16-MXU path (weights bf16, f32 accumulation) ---
    prep_bf16 = prepare_fcnet_params(params)   # bf16 is the default
    out_bf16 = jax.block_until_ready(fwd(prep_bf16, x))
    assert out_bf16.shape == (8, out_dim)
    assert jnp.allclose(out_bf16, ref, atol=5e-2, rtol=5e-2)

    # --- batch not a multiple of the tile: row padding + 2 grid steps ---
    x2 = jax.random.normal(kx2, (40, inp_dim), jnp.float32)
    ref2 = fcnet_forward_ref(params, x2, z1_circle_topology=z1)
    out2 = jax.block_until_ready(fwd(prep_bf16, x2))
    assert out2.shape == (40, out_dim)
    assert jnp.allclose(out2, ref2, atol=5e-2, rtol=5e-2)

    print("KERNEL_OK")
</pallas_src>

<mosaic_0001>
module attributes {stable_mosaic.version = 11 : i64} {
  func.func @_fused_mlp_kernel(%arg0: i32, %arg1: memref<8x4xf32, #tpu.memory_space<vmem>>, %arg2: memref<128x128xf32, #tpu.memory_space<vmem>>, %arg3: memref<1x128xf32, #tpu.memory_space<vmem>>, %arg4: memref<128x128xf32, #tpu.memory_space<vmem>>, %arg5: memref<1x128xf32, #tpu.memory_space<vmem>>, %arg6: memref<128x128xf32, #tpu.memory_space<vmem>>, %arg7: memref<1x128xf32, #tpu.memory_space<vmem>>, %arg8: memref<8x128xf32, #tpu.memory_space<vmem>>) attributes {dimension_semantics = [#tpu.dimension_semantics<parallel>], iteration_bounds = array<i64: 1>, scalar_prefetch = 0 : i64, scratch_operands = 0 : i64, tpu.core_type = #tpu.core_type<tc>, window_params = [{transform_indices = @transform_0, window_bounds = array<i64: 8, 4>}, {pipeline_mode = #tpu.pipeline_mode<synchronous>, transform_indices = @transform_1, window_bounds = array<i64: 128, 128>}, {pipeline_mode = #tpu.pipeline_mode<synchronous>, transform_indices = @transform_2, window_bounds = array<i64: 1, 128>}, {pipeline_mode = #tpu.pipeline_mode<synchronous>, transform_indices = @transform_3, window_bounds = array<i64: 128, 128>}, {pipeline_mode = #tpu.pipeline_mode<synchronous>, transform_indices = @transform_4, window_bounds = array<i64: 1, 128>}, {pipeline_mode = #tpu.pipeline_mode<synchronous>, transform_indices = @transform_5, window_bounds = array<i64: 128, 128>}, {pipeline_mode = #tpu.pipeline_mode<synchronous>, transform_indices = @transform_6, window_bounds = array<i64: 1, 128>}, {transform_indices = @transform_7, window_bounds = array<i64: 8, 128>}]} {
    %c0 = arith.constant 0 : index
    %c0_0 = arith.constant 0 : index
    %0 = vector.load %arg1[%c0, %c0_0] : memref<8x4xf32, #tpu.memory_space<vmem>>, vector<8x4xf32>
    %1 = vector.extract_strided_slice %0 {offsets = [0, 0], sizes = [8, 1], strides = [1, 1]} : vector<8x4xf32> to vector<8x1xf32>
    %2 = math.cos %1 : vector<8x1xf32>
    %3 = math.sin %1 : vector<8x1xf32>
    %4 = vector.extract_strided_slice %0 {offsets = [0, 1], sizes = [8, 3], strides = [1, 1]} : vector<8x4xf32> to vector<8x3xf32>
    %5 = tpu.concatenate %2, %3, %4 in 1 : vector<8x1xf32>, vector<8x1xf32>, vector<8x3xf32> -> vector<8x5xf32>
    %cst = arith.constant 0.000000e+00 : f32
    %6 = vector.broadcast %cst : f32 to vector<8x123xf32>
    %7 = tpu.concatenate %5, %6 in 1 : vector<8x5xf32>, vector<8x123xf32> -> vector<8x128xf32>
    %c0_1 = arith.constant 0 : index
    %c0_2 = arith.constant 0 : index
    %8 = vector.load %arg2[%c0_1, %c0_2] : memref<128x128xf32, #tpu.memory_space<vmem>>, vector<128x128xf32>
    %c0_3 = arith.constant 0 : index
    %c0_4 = arith.constant 0 : index
    %9 = vector.load %arg3[%c0_3, %c0_4] : memref<1x128xf32, #tpu.memory_space<vmem>>, vector<1x128xf32>
    %cst_5 = arith.constant dense<0.000000e+00> : vector<8x128xf32>
    %10 = tpu.matmul %7, %8, %cst_5 {dimension_numbers = #tpu.dot_dimension_numbers<[1], [0], [0], [1], [0, 0, 1, 1], [], []>} : vector<8x128xf32>, vector<128x128xf32>, vector<8x128xf32> -> vector<8x128xf32>
    %11 = vector.broadcast %9 : vector<1x128xf32> to vector<8x128xf32>
    %12 = arith.addf %10, %11 : vector<8x128xf32>
    %cst_6 = arith.constant 2.000000e-01 : f32
    %13 = vector.broadcast %cst_6 : f32 to vector<8x128xf32>
    %14 = arith.mulf %13, %12 : vector<8x128xf32>
    %15 = arith.maximumf %12, %14 : vector<8x128xf32>
    %c0_7 = arith.constant 0 : index
    %c0_8 = arith.constant 0 : index
    %16 = vector.load %arg4[%c0_7, %c0_8] : memref<128x128xf32, #tpu.memory_space<vmem>>, vector<128x128xf32>
    %c0_9 = arith.constant 0 : index
    %c0_10 = arith.constant 0 : index
    %17 = vector.load %arg5[%c0_9, %c0_10] : memref<1x128xf32, #tpu.memory_space<vmem>>, vector<1x128xf32>
    %cst_11 = arith.constant dense<0.000000e+00> : vector<8x128xf32>
    %18 = tpu.matmul %15, %16, %cst_11 {dimension_numbers = #tpu.dot_dimension_numbers<[1], [0], [0], [1], [0, 0, 1, 1], [], []>} : vector<8x128xf32>, vector<128x128xf32>, vector<8x128xf32> -> vector<8x128xf32>
    %19 = vector.broadcast %17 : vector<1x128xf32> to vector<8x128xf32>
    %20 = arith.addf %18, %19 : vector<8x128xf32>
    %cst_12 = arith.constant 2.000000e-01 : f32
    %21 = vector.broadcast %cst_12 : f32 to vector<8x128xf32>
    %22 = arith.mulf %21, %20 : vector<8x128xf32>
    %23 = arith.maximumf %20, %22 : vector<8x128xf32>
    %c0_13 = arith.constant 0 : index
    %c0_14 = arith.constant 0 : index
    %24 = vector.load %arg6[%c0_13, %c0_14] : memref<128x128xf32, #tpu.memory_space<vmem>>, vector<128x128xf32>
    %c0_15 = arith.constant 0 : index
    %c0_16 = arith.constant 0 : index
    %25 = vector.load %arg7[%c0_15, %c0_16] : memref<1x128xf32, #tpu.memory_space<vmem>>, vector<1x128xf32>
    %cst_17 = arith.constant dense<0.000000e+00> : vector<8x128xf32>
    %26 = tpu.matmul %23, %24, %cst_17 {dimension_numbers = #tpu.dot_dimension_numbers<[1], [0], [0], [1], [0, 0, 1, 1], [], []>} : vector<8x128xf32>, vector<128x128xf32>, vector<8x128xf32> -> vector<8x128xf32>
    %27 = vector.broadcast %25 : vector<1x128xf32> to vector<8x128xf32>
    %28 = arith.addf %26, %27 : vector<8x128xf32>
    %c0_18 = arith.constant 0 : index
    %c0_19 = arith.constant 0 : index
    %29 = vector.load %arg8[%c0_18, %c0_19] : memref<8x128xf32, #tpu.memory_space<vmem>>, vector<8x128xf32>
    tpu.vector_store %arg8[%c0_18, %c0_19], %28 {strides = array<i32>} : memref<8x128xf32, #tpu.memory_space<vmem>>, vector<8x128xf32>,
    return
  }
  func.func @transform_0(%arg0: i32) -> (i32, i32) {
    %c0_i32 = arith.constant 0 : i32
    %c0_i32_0 = arith.constant 0 : i32
    return %arg0, %c0_i32 : i32, i32
  }
  func.func @transform_1(%arg0: i32) -> (i32, i32) {
    %c0_i32 = arith.constant 0 : i32
    %c0_i32_0 = arith.constant 0 : i32
    %c0_i32_1 = arith.constant 0 : i32
    return %c0_i32, %c0_i32_0 : i32, i32
  }
  func.func @transform_2(%arg0: i32) -> (i32, i32) {
    %c0_i32 = arith.constant 0 : i32
    %c0_i32_0 = arith.constant 0 : i32
    %c0_i32_1 = arith.constant 0 : i32
    return %c0_i32, %c0_i32_0 : i32, i32
  }
  func.func @transform_3(%arg0: i32) -> (i32, i32) {
    %c0_i32 = arith.constant 0 : i32
    %c0_i32_0 = arith.constant 0 : i32
    %c0_i32_1 = arith.constant 0 : i32
    return %c0_i32, %c0_i32_0 : i32, i32
  }
  func.func @transform_4(%arg0: i32) -> (i32, i32) {
    %c0_i32 = arith.constant 0 : i32
    %c0_i32_0 = arith.constant 0 : i32
    %c0_i32_1 = arith.constant 0 : i32
    return %c0_i32, %c0_i32_0 : i32, i32
  }
  func.func @transform_5(%arg0: i32) -> (i32, i32) {
    %c0_i32 = arith.constant 0 : i32
    %c0_i32_0 = arith.constant 0 : i32
    %c0_i32_1 = arith.constant 0 : i32
    return %c0_i32, %c0_i32_0 : i32, i32
  }
  func.func @transform_6(%arg0: i32) -> (i32, i32) {
    %c0_i32 = arith.constant 0 : i32
    %c0_i32_0 = arith.constant 0 : i32
    %c0_i32_1 = arith.constant 0 : i32
    return %c0_i32, %c0_i32_0 : i32, i32
  }
  func.func @transform_7(%arg0: i32) -> (i32, i32) {
    %c0_i32 = arith.constant 0 : i32
    %c0_i32_0 = arith.constant 0 : i32
    return %arg0, %c0_i32 : i32, i32
  }
}

</mosaic_0001>

<bundles_post_ra>
// kernel: fcnet_forward.1
= control target key start
LH: loop header
LB: loop body
LE: loop exit
PB: predicated region body
PF: predicated region fallthrough
CT: control target
= control target key end

     0   :  { %12 = vsyncpa [#allocation3], 0  ;;  %s993_s0 = inlined_call_operand.vmem [shape: f32[8,4], index: 0, kind: input, shape index: {}]   ;;  %s994_s1 = inlined_call_operand.hbm [shape: f32[128,128], index: 1, kind: input, shape index: {}]   ;;  %s995_s2 = inlined_call_operand.vmem [shape: f32[1,128], index: 2, kind: input, shape index: {}]   ;;  %s996_s3 = inlined_call_operand.hbm [shape: f32[128,128], index: 3, kind: input, shape index: {}]   ;;  %s997_s4 = inlined_call_operand.vmem [shape: f32[1,128], index: 4, kind: input, shape index: {}]   ;;  %s998_s5 = inlined_call_operand.hbm [shape: f32[128,128], index: 5, kind: input, shape index: {}]   ;;  %s999_s6 = inlined_call_operand.vmem [shape: f32[1,128], index: 6, kind: input, shape index: {}]   ;;  %s1000_s7 = inlined_call_operand.vmem [shape: f32[8,128], index: 7, kind: output, shape index: {}]  }
   0x1   :  { %13 = vsyncpa [#allocation5], 0  ;;  %s833_s24 = smov [#allocation4]   ;;  %s834_s26 = smov [#allocation2]  }
   0x2   :  { %s35_s25 = sshll.u32 %s833_s24, 4  ;;  %s21_s27 = sshll.u32 %s834_s26, 4  ;;  %s36_s25 = int_to_ptr.vmem [resolvable:$true] %s35_s25  ;;  %s22_s27 = int_to_ptr.vmem [resolvable:$true] %s21_s27 }
   0x3   :  { %s777_s28 = scalar_lea.vmem %s36_s25, 2048  ;;  %p782_p1 = scmp.lt.s32.totalorder %s36_s25, %s36_s25 }
   0x4   :  { %p778_p0 = scmp.ne.s32.totalorder %s36_s25, %s777_s28  ;;  %p783_p2 = scmp.lt.s32.totalorder %s777_s28, %s777_s28 }
   0x6   :  { %p784_p3 = por %p783_p2, %p782_p1 }
   0x8   :  { %p785_p4 = pnand %p784_p3, %p778_p0 }
   0xa   :  { %788 = shalt.err (!%p785_p4)
}
   0xb   :  { %s835_s29 = smov 128   ;;  %s836_s30 = smov 8  }
   0xc   :  { %41 = dma.hbm_to_vmem [thread:$0]  %s996_s3, 2048, %s36_s25, [#allocation5], %s835_s29, %s835_s29, %s836_s30  }
   0xd   :  { %s797_s10 = scalar_lea.vmem %s22_s27, 2048  ;;  %p802_p6 = scmp.lt.s32.totalorder %s22_s27, %s22_s27 }
   0xe   :  { %p798_p5 = scmp.ne.s32.totalorder %s22_s27, %s797_s10  ;;  %p803_p7 = scmp.lt.s32.totalorder %s797_s10, %s797_s10 }
  0x10   :  { %p804_p8 = por %p803_p7, %p802_p6 }
  0x12   :  { %p805_p9 = pnand %p804_p8, %p798_p5 }
  0x14   :  { %808 = shalt.err (!%p805_p9)
}
  0x15   :  { %27 = dma.hbm_to_vmem [thread:$0]  %s994_s1, 2048, %s22_s27, [#allocation3], %s835_s29, %s835_s29, %s836_s30  }
  0x16   :  { %s837_s13 = smov [#allocation6]  }
  0x17   :  { %s49_s14 = sshll.u32 %s837_s13, 4  ;;  %s50_s14 = int_to_ptr.vmem [resolvable:$true] %s49_s14 }
  0x18   :  { %s817_s15 = scalar_lea.vmem %s50_s14, 2048  ;;  %p822_p11 = scmp.lt.s32.totalorder %s50_s14, %s50_s14 }
  0x19   :  { %p818_p10 = scmp.ne.s32.totalorder %s50_s14, %s817_s15  ;;  %p823_p12 = scmp.lt.s32.totalorder %s817_s15, %s817_s15 }
  0x1b   :  { %p824_p13 = por %p823_p12, %p822_p11 }
  0x1d   :  { %p825_p0 = pnand %p824_p13, %p818_p10 }
  0x1f   :  { %828 = shalt.err (!%p825_p0)
}
  0x20   :  { %55 = dma.hbm_to_vmem [thread:$0]  %s998_s5, 2048, %s50_s14, [#allocation5], %s835_s29, %s835_s29, %s836_s30  }
  0x21   :  { %829 = dma.done.wait [#allocation3], 2048  }
  0x22   :  { %830 = vsyncadd [#allocation3], 4294965248 }
  0x23   :  { %831 = dma.done.wait [#allocation5], 4096  }
  0x24   :  { %832 = vsyncadd [#allocation5], 4294963200  ;;  %v838_v0 = vmov 0.0   ;;  %v901_v1 = vld [vmem:[%s993_s0] sm:$0xff]  ;;  %v304_v2 = vld [vmem:[#allocation2 + $0x78] sm:$0xff]  ;;  %vm845_vm9 = vmmov 0  }
  0x25   :  { %642 = vmatprep.subr.mxu0 %v838_v0  ;;  %677 = vmatprep.subr.mxu1 %v838_v0  ;;  %v303_v3 = vld [vmem:[#allocation2 + $0x70] sm:$0xff]  ;;  %v71_v4 = vand.u32 2139095040, %v901_v1  ;;  %v302_v5 = vld [vmem:[#allocation2 + $0x68] sm:$0xff]  ;;  %v68_v7 = vand.u32 2147483647, %v901_v1  ;;  %v301_v8 = vld [vmem:[#allocation2 + $0x60] sm:$0xff] }
  0x26   :  { %643 = vmatpush3.msra.mxu0 %v304_v2  ;;  %v300_v10 = vld [vmem:[#allocation2 + $0x58] sm:$0xff]  ;;  %v299_v13 = vld [vmem:[#allocation2 + $0x50] sm:$0xff]  ;;  %v298_v15 = vld [vmem:[#allocation2 + $0x48] sm:$0xff]  ;;  %v839_v21 = vmov 683565275   ;;  %vm70_vm7 = vcmp.lt.s32.totalorder %v901_v1, 0  ;;  %674 = vmatprep.mubr.msk.f32.mxu0 %vm845_vm9, %v838_v0 }
  0x27   :  { %644 = vmatprep.subr.mxu0 %v838_v0  ;;  %v72_v6 = vshrl.u32 %v71_v4, 23  ;;  %v75_v12 = vand.u32 8388607, %v68_v7  ;;  %v297_v19 = vld [vmem:[#allocation2 + $0x40] sm:$0xff]  ;;  %v840_v23 = vmov 2475754826   ;;  %709 = vmatprep.mubr.msk.f32.mxu1 %vm845_vm9, %v838_v0 }
  0x28   :  { %645 = vmatpush3.msra.mxu0 %v303_v3  ;;  %v841_v25 = vmov 2131351028   ;;  %v842_v27 = vmov 2102212464   ;;  %v843_v29 = vmov 920167782  }
  0x29   :  { %646 = vmatprep.subr.mxu0 %v838_v0  ;;  %v579_v9 = vadd.s32 4294967169, %v72_v6  ;;  %v76_v17 = vor.u32 8388608, %v75_v12  ;;  %v296_v31 = vld [vmem:[#allocation2 + $0x38] sm:$0xff]  ;;  %v844_v37 = vmov 1326507024   ;;  %v295_v40 = vld [vmem:[#allocation2 + $0x30] sm:$0xff] }
  0x2a   :  { %647 = vmatpush3.msra.mxu0 %v302_v5  ;;  %v294_v46 = vld [vmem:[#allocation2 + $0x28] sm:$0xff]  ;;  %v293_v54 = vld [vmem:[#allocation2 + $0x20] sm:$0xff]  ;;  %v292_v60 = vld [vmem:[#allocation2 + $0x18] sm:$0xff]  ;;  %vm69_vm8 = vcmp.le.f32.partialorder %v68_v7, 0.7853982  ;;  %s846_s0 = smov 1  }
  0x2b   :  { %648 = vmatprep.subr.mxu0 %v838_v0  ;;  %v78_v11 = vadd.s32 1, %v579_v9  ;;  %v116_v39 = vshll.u32 %v76_v17, 8  ;;  %v289_v7 = vld [vmem:[#allocation2] sm:$0xff] }
  0x2c   :  { %649 = vmatpush3.msra.mxu0 %v301_v8 }
  0x2d   :  { %650 = vmatprep.subr.mxu0 %v838_v0  ;;  %vm79_vm0 = vcmp.gt.s32.totalorder %v78_v11, 0 }
  0x2e   :  { %651 = vmatpush3.msra.mxu0 %v300_v10  ;;  %v80_v14 = vsel %vm79_vm0, %v78_v11, 0  ;;  %vm160_vm0 = vweird.f32 %v901_v1 }
  0x2f   :  { %652 = vmatprep.subr.mxu0 %v838_v0  ;;  %v82_v16 = vand.u32 31, %v80_v14  ;;  %v81_v18 = vshrl.u32 %v80_v14, 5 }
  0x30   :  { %653 = vmatpush3.msra.mxu0 %v299_v13 }
  0x31   :  { %654 = vmatprep.subr.mxu0 %v838_v0  ;;  %v83_v20 = vsub.s32 32, %v82_v16  ;;  %v85_v22 = vshll.u32 %v839_v21, %v82_v16  ;;  %v88_v24 = vshll.u32 %v840_v23, %v82_v16  ;;  %v91_v26 = vshll.u32 %v841_v25, %v82_v16 }
  0x32   :  { %655 = vmatpush3.msra.mxu0 %v298_v15  ;;  %v94_v28 = vshll.u32 %v842_v27, %v82_v16  ;;  %v97_v30 = vshll.u32 %v843_v29, %v82_v16  ;;  %vm100_vm1 = vcmp.lt.s32.totalorder %v81_v18, 1  ;;  %vm103_vm2 = vcmp.lt.s32.totalorder %v81_v18, 4 }
  0x33   :  { %656 = vmatprep.subr.mxu0 %v838_v0  ;;  %v84_v32 = vshrl.u32 %v839_v21, %v83_v20  ;;  %v86_v33 = vshrl.u32 %v840_v23, %v83_v20  ;;  %v89_v34 = vshrl.u32 %v841_v25, %v83_v20  ;;  %v92_v35 = vshrl.u32 %v842_v27, %v83_v20 }
  0x34   :  { %657 = vmatpush3.msra.mxu0 %v297_v19  ;;  %v95_v36 = vshrl.u32 %v843_v29, %v83_v20  ;;  %v98_v38 = vshrl.u32 %v844_v37, %v83_v20  ;;  %vm101_vm3 = vcmp.lt.s32.totalorder %v81_v18, 2  ;;  %vm102_vm4 = vcmp.lt.s32.totalorder %v81_v18, 3  ;;  %v290_v37 = vld [vmem:[#allocation2 + $0x8] sm:$0xff] }
  0x35   :  { %658 = vmatprep.subr.mxu0 %v838_v0  ;;  %v87_v41 = vor.u32 %v86_v33, %v85_v22  ;;  %v90_v42 = vor.u32 %v89_v34, %v88_v24  ;;  %v93_v43 = vor.u32 %v92_v35, %v91_v26 }
  0x36   :  { %659 = vmatpush3.msra.mxu0 %v296_v31  ;;  %v96_v44 = vor.u32 %v95_v36, %v94_v28  ;;  %v99_v45 = vor.u32 %v98_v38, %v97_v30  ;;  %v291_v36 = vld [vmem:[#allocation2 + $0x10] sm:$0xff] }
  0x37   :  { %660 = vmatprep.subr.mxu0 %v838_v0  ;;  %v104_v47 = vsel %vm100_vm1, %v84_v32, %v87_v41  ;;  %v105_v48 = vsel %vm103_vm2, %v93_v43, 2102212464  ;;  %v108_v49 = vsel %vm100_vm1, %v87_v41, %v90_v42  ;;  %v112_v50 = vsel %vm100_vm1, %v90_v42, %v93_v43  ;;  %v398_v41 = vld [vmem:[#allocation4 + $0x70] sm:$0xff] }
  0x38   :  { %661 = vmatpush3.msra.mxu0 %v295_v40  ;;  %v106_v51 = vsel %vm102_vm4, %v90_v42, %v105_v48  ;;  %v109_v52 = vsel %vm103_vm2, %v96_v44, 920167782  ;;  %v113_v53 = vsel %vm103_vm2, %v99_v45, 1326507024  ;;  %v399_v40 = vld [vmem:[#allocation4 + $0x78] sm:$0xff]  ;;  %v397_v45 = vld [vmem:[#allocation4 + $0x68] sm:$0xff] }
  0x39   :  { %662 = vmatprep.subr.mxu0 %v838_v0  ;;  %v110_v55 = vsel %vm102_vm4, %v93_v43, %v109_v52  ;;  %v114_v56 = vsel %vm102_vm4, %v96_v44, %v113_v53  ;;  %v107_v57 = vsel %vm101_vm3, %v104_v47, %v106_v51  ;;  %678 = vmatpush3.msra.mxu1 %v399_v40  ;;  %vm283_vm1 = vcmask 7168  }
  0x3a   :  { %663 = vmatpush3.msra.mxu0 %v294_v46  ;;  %v111_v58 = vsel %vm101_vm3, %v108_v49, %v110_v55  ;;  %v115_v59 = vsel %vm101_vm3, %v112_v50, %v114_v56  ;;  %v123_v3 = vmul.u32 %v116_v39, %v107_v57  ;;  %679 = vmatprep.subr.mxu1 %v838_v0  ;;  %v396_v49 = vld [vmem:[#allocation4 + $0x60] sm:$0xff]  ;;  %v394_v57 = vld [vmem:[#allocation4 + $0x50] sm:$0xff]  ;;  %vm285_vm2 = vcmask 15360  }
  0x3b   :  { %664 = vmatprep.subr.mxu0 %v838_v0  ;;  %v924_v61 = vmul.u32.u64.low %v116_v39, %v115_v59  ;;  %v925_v62 = vmul.u32.u64.high %v116_v39, %v115_v59, %v924_v61  ;;  %v927_v63 = vmul.u32.u64.low %v116_v39, %v111_v58  ;;  %v928_v2 = vmul.u32.u64.high %v116_v39, %v111_v58, %v927_v63  ;;  %680 = vmatpush3.msra.mxu1 %v398_v41  ;;  %v393_v58 = vld [vmem:[#allocation4 + $0x48] sm:$0xff]  ;;  %v392_v59 = vld [vmem:[#allocation4 + $0x40] sm:$0xff] }
  0x3c   :  { %665 = vmatpush3.msra.mxu0 %v293_v54  ;;  %681 = vmatprep.subr.mxu1 %v838_v0  ;;  %v395_v54 = vld [vmem:[#allocation4 + $0x58] sm:$0xff]  ;;  %v390_v61 = vld [vmem:[#allocation4 + $0x30] sm:$0xff]  ;;  %vm287_vm3 = vcmask 39936  }
  0x3d   :  { %666 = vmatprep.subr.mxu0 %v838_v0  ;;  %vm125_vm5 = vc.u32 %v925_v62, %v927_v63  ;;  %v126_v4 = vadd.s32 1, %v928_v2  ;;  %v124_v16 = vadd.s32 %v927_v63, %v925_v62  ;;  %682 = vmatpush3.msra.mxu1 %v397_v45  ;;  %v389_v62 = vld [vmem:[#allocation4 + $0x28] sm:$0xff]  ;;  %v388_v63 = vld [vmem:[#allocation4 + $0x20] sm:$0xff] }
  0x3e   :  { %667 = vmatpush3.msra.mxu0 %v292_v60  ;;  %683 = vmatprep.subr.mxu1 %v838_v0  ;;  %v391_v60 = vld [vmem:[#allocation4 + $0x38] sm:$0xff] }
  0x3f   :  { %668 = vmatprep.subr.mxu0 %v838_v0  ;;  %v127_v5 = vsel %vm125_vm5, %v126_v4, %v928_v2  ;;  %684 = vmatpush3.msra.mxu1 %v396_v49 }
  0x40   :  { %v128_v6 = vadd.s32 %v127_v5, %v123_v3  ;;  %669 = vmatpush3.msra.mxu0 %v291_v36  ;;  %685 = vmatprep.subr.mxu1 %v838_v0  ;;  %v387_v5 = vld [vmem:[#allocation4 + $0x18] sm:$0xff] }
  0x41   :  { %670 = vmatprep.subr.mxu0 %v838_v0  ;;  %686 = vmatpush3.msra.mxu1 %v395_v54 }
  0x42   :  { %v129_v8 = vadd.s32 536870912, %v128_v6  ;;  %671 = vmatpush3.msra.mxu0 %v290_v37  ;;  %687 = vmatprep.subr.mxu1 %v838_v0 }
  0x43   :  { %672 = vmatprep.subr.mxu0 %v838_v0  ;;  %688 = vmatpush3.msra.mxu1 %v394_v57 }
  0x44   :  { %v130_v9 = vshrl.u32 %v129_v8, 30  ;;  %673 = vmatpush3.msra.mxu0 %v289_v7  ;;  %689 = vmatprep.subr.mxu1 %v838_v0  ;;  %v385_v8 = vld [vmem:[#allocation4 + $0x8] sm:$0xff] }
  0x45   :  { %712 = vmatprep.subr.mxu0 %v838_v0  ;;  %690 = vmatpush3.msra.mxu1 %v393_v58 }
  0x46   :  { %v131_v10 = vshll.u32 %v130_v9, 30  ;;  %v154_v29 = vsub.s32 4, %v130_v9  ;;  %691 = vmatprep.subr.mxu1 %v838_v0 }
  0x47   :  { %692 = vmatpush3.msra.mxu1 %v392_v59 }
  0x48   :  { %v132_v11 = vsub.s32 %v128_v6, %v131_v10  ;;  %v155_v32 = vsel %vm70_vm7, %v154_v29, %v130_v9  ;;  %693 = vmatprep.subr.mxu1 %v838_v0  ;;  %v386_v6 = vld [vmem:[#allocation4 + $0x10] sm:$0xff]  ;;  %v384_v9 = vld [vmem:[#allocation4] sm:$0xff]  ;;  %v494_v10 = vld [vmem:[#allocation6 + $0x78] sm:$0xff] }
  0x49   :  { %v157_v34 = vsel %vm69_vm8, 0, %v155_v32  ;;  %694 = vmatpush3.msra.mxu1 %v391_v60  ;;  %v481_v29 = vld [vmem:[#allocation6 + $0x10] sm:$0xff]  ;;  %v589_v32 = vld [vmem:[%s997_s4] ss:$0 sm:$0xff] }
  0x4a   :  { %v134_v12 = vsub.s32 0, %v132_v11  ;;  %v264_v35 = vadd.s32 3, %v157_v34  ;;  %v161_v38 = vand.u32 3, %v157_v34  ;;  %695 = vmatprep.subr.mxu1 %v838_v0 }
  0x4b   :  { %696 = vmatpush3.msra.mxu1 %v390_v61 }
  0x4c   :  { %v580_v13 = vmin.u32 %v134_v12, %v132_v11  ;;  %v265_v39 = vand.u32 3, %v264_v35  ;;  %vm166_vm10 = vcmp.eq.s32.totalorder %v161_v38, 2  ;;  %vm163_vm12 = vcmp.eq.s32.totalorder %v161_v38, 0  ;;  %697 = vmatprep.subr.mxu1 %v838_v0  ;;  %v492_v12 = vld [vmem:[#allocation6 + $0x68] sm:$0xff] }
  0x4d   :  { %vm162_vm14 = vcmp.lt.s32.totalorder %v161_v38, 2  ;;  %698 = vmatpush3.msra.mxu1 %v389_v62  ;;  %v590_v38 = vld [vmem:[%s999_s6] ss:$0 sm:$0xff] }
  0x4e   :  { %v136_v14 = vclz %v580_v13  ;;  %vm270_vm11 = vcmp.eq.s32.totalorder %v265_v39, 2  ;;  %vm267_vm13 = vcmp.eq.s32.totalorder %v265_v39, 0  ;;  %vm266_vm15 = vcmp.lt.s32.totalorder %v265_v39, 2  ;;  %699 = vmatprep.subr.mxu1 %v838_v0  ;;  %v491_v13 = vld [vmem:[#allocation6 + $0x60] sm:$0xff] }
  0x4f   :  { %700 = vmatpush3.msra.mxu1 %v388_v63 }
  0x50   :  { %v581_v15 = vadd.s32 4294967294, %v136_v14  ;;  %701 = vmatprep.subr.mxu1 %v838_v0  ;;  %v490_v14 = vld [vmem:[#allocation6 + $0x58] sm:$0xff] }
  0x51   :  { %702 = vmatpush3.msra.mxu1 %v387_v5 }
  0x52   :  { %vm582_vm6 = vcmp.lt.s32.totalorder %v581_v15, 0  ;;  %703 = vmatprep.subr.mxu1 %v838_v0 }
  0x53   :  { %v139_v17 = vsel %vm582_vm6, 0, %v581_v15  ;;  %704 = vmatpush3.msra.mxu1 %v386_v6  ;;  %v489_v15 = vld [vmem:[#allocation6 + $0x50] sm:$0xff] }
  0x54   :  { %v140_v18 = vsub.s32 32, %v139_v17  ;;  %v141_v19 = vshll.u32 %v132_v11, %v139_v17  ;;  %v144_v20 = vsub.s32 4294967266, %v139_v17  ;;  %705 = vmatprep.subr.mxu1 %v838_v0  ;;  %v493_v11 = vld [vmem:[#allocation6 + $0x70] sm:$0xff]  ;;  %v487_v17 = vld [vmem:[#allocation6 + $0x40] sm:$0xff] }
  0x55   :  { %706 = vmatpush3.msra.mxu1 %v385_v8 }
  0x56   :  { %v142_v21 = vshrl.u32 %v124_v16, %v140_v18  ;;  %v145_v22 = vadd.s32 127, %v144_v20  ;;  %707 = vmatprep.subr.mxu1 %v838_v0  ;;  %v488_v16 = vld [vmem:[#allocation6 + $0x48] sm:$0xff]  ;;  %v486_v18 = vld [vmem:[#allocation6 + $0x38] sm:$0xff] }
  0x57   :  { %708 = vmatpush3.msra.mxu1 %v384_v9  ;;  %v484_v20 = vld [vmem:[#allocation6 + $0x28] sm:$0xff] }
  0x58   :  { %v143_v23 = vor.u32 %v142_v21, %v141_v19  ;;  %v146_v24 = vshll.u32 %v145_v22, 23  ;;  %v485_v19 = vld [vmem:[#allocation6 + $0x30] sm:$0xff]  ;;  %v483_v21 = vld [vmem:[#allocation6 + $0x20] sm:$0xff] }
  0x59   :  { %v587_v22 = vld [vmem:[%s995_s2] ss:$0 sm:$0xff] }
  0x5a   :  { %v147_v25 = vor.u32 4788187, %v146_v24  ;;  %v150_v26 = vcvt.s32.f32 %v143_v23 }
  0x5c   :  { %v148_v27 = vand.u32 2147483647, %v147_v25 }
  0x5e   :  { %v151_v28 = vmul.f32 %v150_v26, %v148_v27 }
  0x60   :  { %v152_v30 = vxor.u32 2147483648, %v151_v28 }
  0x62   :  { %v153_v31 = vsel %vm70_vm7, %v152_v30, %v151_v28  ;;  %v482_v28 = vld [vmem:[#allocation6 + $0x18] sm:$0xff]  ;;  %v480_v30 = vld [vmem:[#allocation6 + $0x8] sm:$0xff] }
  0x63   :  { %v156_v33 = vsel %vm69_vm8, %v901_v1, %v153_v31  ;;  %v479_v31 = vld [vmem:[#allocation6] sm:$0xff] }
  0x64   :  { %765 = vcosq.f32 %v156_v33 }
  0x65   :  { %767 = vsinq.f32 %v156_v33 }
  0x71   :  { %v766_v42 = vpop.eup %765 }
  0x72   :  { %v768_v43 = vpop.eup %767  ;;  %v167_v44 = vxor.u32 2147483648, %v766_v42 }
  0x73   :  { %v164_v46 = vxor.u32 2147483648, %v768_v43 }
  0x74   :  { %v272_v47 = vsel %vm270_vm11, %v167_v44, %v768_v43  ;;  %v168_v48 = vsel %vm166_vm10, %v167_v44, %v768_v43 }
  0x75   :  { %v269_v50 = vsel %vm267_vm13, %v766_v42, %v164_v46  ;;  %v165_v51 = vsel %vm163_vm12, %v766_v42, %v164_v46 }
  0x76   :  { %v273_v52 = vsel %vm266_vm15, %v269_v50, %v272_v47  ;;  %v169_v53 = vsel %vm162_vm14, %v165_v51, %v168_v48 }
  0x77   :  { %v274_v55 = vsel %vm160_vm0, nan, %v273_v52  ;;  %v170_v56 = vsel %vm160_vm0, nan, %v169_v53 }
  0x78   :  { %276 = vrot.lane.b32.xlu0 %v274_v55, %s846_s0 }
  0x7c   :  { %280 = vrot.lane.b32.xlu0 %v901_v1, %s846_s0 }
  0xea   :  { %v277_v1 = vpop.permute.xlu0 %276 }
  0xeb   :  { %v284_v2 = vsel %vm283_vm1, %v170_v56, %v277_v1 }
  0xee   :  { %v281_v3 = vpop.permute.xlu0 %280 }
  0xef   :  { %v286_v4 = vsel %vm285_vm2, %v284_v2, %v281_v3 }
  0xf0   :  { %675 = vmatmul.mubr.msk.f32.vlgmr.msra.gmra.mxu0 %vm287_vm3, %v286_v4 }
  0xf1   :  { %744 = vmatprep.mubr.msk.f32.mxu0 %vm845_vm9, %v838_v0  ;;  %713 = vmatpush3.msra.mxu0 %v494_v10 }
  0xf2   :  { %714 = vmatprep.subr.mxu0 %v838_v0 }
  0xf3   :  { %715 = vmatpush3.msra.mxu0 %v493_v11 }
  0xf4   :  { %716 = vmatprep.subr.mxu0 %v838_v0 }
  0xf5   :  { %717 = vmatpush3.msra.mxu0 %v492_v12 }
  0xf6   :  { %718 = vmatprep.subr.mxu0 %v838_v0 }
  0xf7   :  { %719 = vmatpush3.msra.mxu0 %v491_v13 }
  0xf8   :  { %720 = vmatprep.subr.mxu0 %v838_v0 }
  0xf9   :  { %721 = vmatpush3.msra.mxu0 %v490_v14 }
  0xfa   :  { %722 = vmatprep.subr.mxu0 %v838_v0 }
  0xfb   :  { %723 = vmatpush3.msra.mxu0 %v489_v15 }
  0xfc   :  { %724 = vmatprep.subr.mxu0 %v838_v0 }
  0xfd   :  { %725 = vmatpush3.msra.mxu0 %v488_v16 }
  0xfe   :  { %726 = vmatprep.subr.mxu0 %v838_v0 }
  0xff   :  { %727 = vmatpush3.msra.mxu0 %v487_v17 }
 0x100   :  { %728 = vmatprep.subr.mxu0 %v838_v0 }
 0x101   :  { %729 = vmatpush3.msra.mxu0 %v486_v18 }
 0x102   :  { %730 = vmatprep.subr.mxu0 %v838_v0 }
 0x103   :  { %731 = vmatpush3.msra.mxu0 %v485_v19 }
 0x104   :  { %732 = vmatprep.subr.mxu0 %v838_v0 }
 0x105   :  { %733 = vmatpush3.msra.mxu0 %v484_v20 }
 0x106   :  { %734 = vmatprep.subr.mxu0 %v838_v0 }
 0x107   :  { %735 = vmatpush3.msra.mxu0 %v483_v21 }
 0x108   :  { %736 = vmatprep.subr.mxu0 %v838_v0 }
 0x109   :  { %737 = vmatpush3.msra.mxu0 %v482_v28 }
 0x10a   :  { %738 = vmatprep.subr.mxu0 %v838_v0 }
 0x10b   :  { %739 = vmatpush3.msra.mxu0 %v481_v29 }
 0x10c   :  { %740 = vmatprep.subr.mxu0 %v838_v0 }
 0x10d   :  { %741 = vmatpush3.msra.mxu0 %v480_v30 }
 0x10e   :  { %742 = vmatprep.subr.mxu0 %v838_v0 }
 0x10f   :  { %743 = vmatpush3.msra.mxu0 %v479_v31 }
 0x1b0   :  { %v378_v23 = vpop.f32.mrf.mxu0 }
 0x1b1   :  { %v379_v24 = vadd.f32 %v587_v22, %v378_v23 }
 0x1b2   :  { %v676_v25 = vpop.f32.mrf.mxu0 }
 0x1b3   :  { %v382_v26 = vmul.f32 0.2, %v379_v24 }
 0x1b5   :  { %v383_v27 = vmax.f32 %v379_v24, %v382_v26 }
 0x1b7   :  { %710 = vmatmul.mubr.f32.vlgmr.msra.gmra.mxu1 %v383_v27 }
 0x277   :  { %v473_v33 = vpop.f32.mrf.mxu1 }
 0x278   :  { %v474_v34 = vadd.f32 %v589_v32, %v473_v33 }
 0x279   :  { %v711_v35 = vpop.f32.mrf.mxu1 }
 0x27a   :  { %v477_v36 = vmul.f32 0.2, %v474_v34 }
 0x27c   :  { %v478_v37 = vmax.f32 %v474_v34, %v477_v36 }
 0x27e   :  { %745 = vmatmul.mubr.f32.vlgmr.msra.gmra.mxu0 %v478_v37 }
 0x33e   :  { %v568_v39 = vpop.f32.mrf.mxu0 }
 0x33f   :  { %v569_v7 = vadd.f32 %v590_v38, %v568_v39 }
 0x340   :  { %v746_v40 = vpop.f32.mrf.mxu0 }
 0x341   :  { %572 = vst [vmem:[%s1000_s7] sm:$0xff] %v569_v7 }
 0x342   :  { %577 = vsyncpa [#allocation3], 1 }
 0x343   :  { %578 = vsyncpa [#allocation5], 1 }

</bundles_post_ra>
